<compile_context>
chip_gen: v5e
topology: v5e:2x2
jax: 0.10.0
libtpu: 0.0.40
codegen_flags: <defaults>
</compile_context>

<pallas_src>
import jax
import jax.numpy as jnp
from jax.experimental import pallas as pl
from jax.experimental.pallas import tpu as pltpu

_LANE = 128
_MAX_COLS = 8192           # cap on the lane-dense last dim of the 2-D slab
_BLOCK_ELEMS = 512 * 1024  # ~2 MiB f32 per buffer (fits default scoped VMEM on all chips)
_FALLBACK_COLS = 1024      # used only when the element count is not a multiple of 128


def _denorm_quant_renorm_kernel(coef_ref, x_ref, o_ref):
    """out = clip(round(x*A + B), 0, 255) * C + D  (A,B,C,D scalars in SMEM).

    coef_ref : SMEM (4,) float32 -> [A, B, C, D]
    x_ref    : VMEM (block_rows, cols) tile of the flattened input
    o_ref    : VMEM (block_rows, cols) tile of the output
    """
    a = coef_ref[0]
    b = coef_ref[1]
    c = coef_ref[2]
    d = coef_ref[3]
    x = x_ref[...]
    # TODO(synk): real Quantization_H265 (libx265 encode/decode) has no Pallas
    # equivalent; only its deterministic 8-bit uniform quantization is kept.
    q = jnp.clip(jnp.round(x * a + b), 0.0, 255.0)
    o_ref[...] = q * c + d


def _pick_cols(n):
    """Largest multiple of 128 that divides n, capped at _MAX_COLS (0 if none)."""
    for k in range(min(_MAX_COLS, n) // _LANE, 0, -1):
        w = k * _LANE
        if n % w == 0:
            return w
    return 0


def _pick_block_rows(rows, cols):
    """Block row count: ~2 MiB f32 per buffer, multiple of 8 (or full extent)."""
    target_rows = max(8, (_BLOCK_ELEMS // cols) // 8 * 8)
    if rows <= target_rows:
        # Would be a single block.  If there is enough work, split into two
        # blocks so both TensorCores participate on v7x (dimension_semantics
        # "parallel").  Block rows must stay a multiple of 8 (or == rows).
        if rows >= 16:
            half = ((rows + 1) // 2 + 7) // 8 * 8
            return min(half, rows)
        return rows
    return target_rows


@jax.jit
def _run_elementwise(x, coef):
    """Reshape x to a lane-dense (rows, cols) slab, run the fused kernel."""
    orig_shape = x.shape
    orig_dtype = x.dtype
    n = x.size
    flat = x.reshape(-1)
    if flat.dtype != jnp.float32:
        flat = flat.astype(jnp.float32)

    cols = _pick_cols(n)
    padded = False
    if cols == 0:
        # Rare fallback: element count not a multiple of 128 -> pad the tail once.
        cols = min(_FALLBACK_COLS, max(_LANE, n))
        cols = max(_LANE, (cols // _LANE) * _LANE)
        pad = (-n) % cols
        if pad:
            flat = jnp.pad(flat, (0, pad))
            padded = True

    rows = flat.shape[0] // cols
    x2d = flat.reshape(rows, cols)

    block_rows = _pick_block_rows(rows, cols)
    num_blocks = pl.cdiv(rows, block_rows)

    out2d = pl.pallas_call(
        _denorm_quant_renorm_kernel,
        out_shape=jax.ShapeDtypeStruct((rows, cols), jnp.float32),
        grid=(num_blocks,),
        in_specs=[
            pl.BlockSpec(memory_space=pltpu.MemorySpace.SMEM),
            pl.BlockSpec((block_rows, cols), lambda i: (i, 0)),
        ],
        out_specs=pl.BlockSpec((block_rows, cols), lambda i: (i, 0)),
        compiler_params=pltpu.CompilerParams(
            dimension_semantics=("parallel",),
        ),
    )(coef, x2d)

    if padded:
        out = out2d.reshape(-1)[:n].reshape(orig_shape)
    else:
        out = out2d.reshape(orig_shape)
    return out.astype(orig_dtype)


class VideoPreCompressor:
    """JAX / Pallas port of SMC_ICCV2023.pre_compressor.VideoPreCompressor.

    Supported test modes: 'hd', 'feature_comp' (pass-through, zero costs) and
    'raw' (de-normalize -> codec quantization -> re-normalize, fused Pallas
    kernel).  'smc_plus' requires the external DiffCompensate_SMCPlus network.
    """

    def __init__(self, test_mode="raw", test_compress_q=27):
        self.test_mode = test_mode
        self.test_compress_q = test_compress_q
        # self.dummy = nn.Linear(1, 1) in the reference — unused in forward.
        self.dummy_w = jnp.array([[0.5]], dtype=jnp.float32)
        self.dummy_b = jnp.array([0.0], dtype=jnp.float32)
        if test_mode == "smc_plus":
            # TODO(synk): DiffCompensate_SMCPlus ('smc_plus' mode) is an external
            # learned network with no in-script definition; not implemented.
            raise NotImplementedError("smc_plus mode is not supported")

    @staticmethod
    def _d2_to_d3(x, t):
        bt, c, h, w = x.shape
        b = bt // t
        return jnp.transpose(x.reshape(b, t, c, h, w), (0, 2, 1, 3, 4))

    @staticmethod
    def _d3_to_d2(x):
        b, c, t, h, w = x.shape
        return jnp.transpose(x, (0, 2, 1, 3, 4)).reshape(b * t, c, h, w)

    def forward(self, x, img_norm_cfg):
        if x.ndim == 4:
            x_format = "2d"
            bt = x.shape[0]
            b = int(img_norm_cfg["mean"].shape[0]) if img_norm_cfg else bt
            clip_length = bt // b
        elif x.ndim == 5:
            x_format = "3d"
            b = x.shape[0]
            clip_length = x.shape[2]
        else:
            raise ValueError("x must be 4-D or 5-D")
        del clip_length  # layout glue only; the element-wise path is layout-invariant

        if self.test_mode in ["hd", "feature_comp"]:
            code_bpp = jnp.zeros((x.shape[0], 1), jnp.float32)
            h265_bitcosts = jnp.zeros((x.shape[0], 1), jnp.float32)
            return h265_bitcosts, code_bpp, x

        if self.test_mode == "raw":
            # Fold the whole chain into out = clip(round(x*A + B), 0, 255)*C + D.
            #   with cfg:    A = std_raw, B = mean_raw, C = 1/std_raw, D = -mean_raw/std_raw
            #   without cfg: A = 255,     B = 0,        C = 1/255,     D = 0
            if img_norm_cfg:
                mean_raw = jnp.asarray(img_norm_cfg["mean"], jnp.float32)[0]
                std_raw = jnp.asarray(img_norm_cfg["std"], jnp.float32)[0]
                a_c = std_raw
                b_c = mean_raw
                c_c = 1.0 / std_raw
                d_c = -mean_raw / std_raw
            else:
                a_c = jnp.float32(255.0)
                b_c = jnp.float32(0.0)
                c_c = jnp.float32(1.0 / 255.0)
                d_c = jnp.float32(0.0)
            coef = jnp.stack([a_c, b_c, c_c, d_c]).astype(jnp.float32)

            # NOTE: the d2_to_d3 / d3_to_d2 round trip around the codec in the
            # reference cancels for this element-wise stand-in, so the kernel
            # runs on x in its native layout.
            x_out = _run_elementwise(x, coef)

            # Bit costs come from the external H.265 encoder; returned as zeros.
            n_clips = x.shape[0] if x_format == "3d" else b
            h265_bitcosts = jnp.zeros((n_clips, 1), jnp.float32)
            code_bpp = jnp.zeros((n_clips, 1), jnp.float32)
            return h265_bitcosts, code_bpp, x_out

        raise NotImplementedError(self.test_mode)

    __call__ = forward


if __name__ == "__main__":
    key = jax.random.PRNGKey(0)
    # Small 5-D ('3d') input: (batch=2, channels=3, clip_len=4, H=16, W=16).
    b, c, t, h, w = 2, 3, 4, 16, 16
    k1, k2 = jax.random.split(key)
    x = jax.random.normal(k1, (b, c, t, h, w), dtype=jnp.float32)
    img_norm_cfg = {
        "mean": jnp.array([123.675, 116.28, 103.53], dtype=jnp.float32),
        "std": jnp.array([58.395, 57.12, 57.375], dtype=jnp.float32),
    }

    model = VideoPreCompressor(test_mode="raw")
    h265_bitcosts, code_bpp, x_out = model(x, img_norm_cfg)
    jax.block_until_ready((h265_bitcosts, code_bpp, x_out))

    # Sanity: shapes must match PyTorch semantics.
    assert x_out.shape == x.shape
    assert h265_bitcosts.shape == (b, 1)
    assert code_bpp.shape == (b, 1)

    # Numerical check against a pure-jnp reference of the same math
    # (tolerance covers possible 1-LSB quantization flips at rounding
    # boundaries due to the folded-coefficient formulation).
    mean0 = img_norm_cfg["mean"][0] / 255.0
    std0 = img_norm_cfg["std"][0] / 255.0
    y_ref = x * std0 + mean0
    yq_ref = jnp.clip(jnp.round(y_ref * 255.0), 0.0, 255.0) / 255.0
    ref = (yq_ref - mean0) / std0
    max_err = float(jnp.max(jnp.abs(x_out - ref)))
    assert max_err < 2e-2, max_err

    # Also exercise the 2-D path: (b*t, c, h, w).
    x2d = jax.random.normal(k2, (b * t, c, h, w), dtype=jnp.float32)
    out2 = model(x2d, img_norm_cfg)
    jax.block_until_ready(out2)
    assert out2[2].shape == x2d.shape

    print("KERNEL_OK")
</pallas_src>

<mosaic_0001>
module attributes {stable_mosaic.version = 11 : i64} {
  func.func @_denorm_quant_renorm_kernel(%arg0: i32, %arg1: memref<4xf32, #tpu.memory_space<smem>>, %arg2: memref<1x6144xf32, #tpu.memory_space<vmem>>, %arg3: memref<1x6144xf32, #tpu.memory_space<vmem>>) attributes {dimension_semantics = [#tpu.dimension_semantics<parallel>], iteration_bounds = array<i64: 1>, scalar_prefetch = 0 : i64, scratch_operands = 0 : i64, tpu.core_type = #tpu.core_type<tc>, window_params = [{transform_indices = @transform_0, window_bounds = array<i64: 4>}, {transform_indices = @transform_1, window_bounds = array<i64: 1, 6144>}, {transform_indices = @transform_2, window_bounds = array<i64: 1, 6144>}]} {
    %c0 = arith.constant 0 : index
    %0 = memref.load %arg1[%c0] : memref<4xf32, #tpu.memory_space<smem>>
    %c1 = arith.constant 1 : index
    %1 = memref.load %arg1[%c1] : memref<4xf32, #tpu.memory_space<smem>>
    %c2 = arith.constant 2 : index
    %2 = memref.load %arg1[%c2] : memref<4xf32, #tpu.memory_space<smem>>
    %c3 = arith.constant 3 : index
    %3 = memref.load %arg1[%c3] : memref<4xf32, #tpu.memory_space<smem>>
    %c0_0 = arith.constant 0 : index
    %c0_1 = arith.constant 0 : index
    %4 = vector.load %arg2[%c0_0, %c0_1] : memref<1x6144xf32, #tpu.memory_space<vmem>>, vector<1x6144xf32>
    %5 = vector.broadcast %0 : f32 to vector<1x6144xf32>
    %6 = arith.mulf %4, %5 : vector<1x6144xf32>
    %7 = vector.broadcast %1 : f32 to vector<1x6144xf32>
    %8 = arith.addf %6, %7 : vector<1x6144xf32>
    %9 = math.roundeven %8 : vector<1x6144xf32>
    %cst = arith.constant 0.000000e+00 : f32
    %cst_2 = arith.constant 2.550000e+02 : f32
    %10 = vector.broadcast %cst : f32 to vector<1x6144xf32>
    %11 = arith.maximumf %10, %9 : vector<1x6144xf32>
    %12 = vector.broadcast %cst_2 : f32 to vector<1x6144xf32>
    %13 = arith.minimumf %12, %11 : vector<1x6144xf32>
    %14 = vector.broadcast %2 : f32 to vector<1x6144xf32>
    %15 = arith.mulf %13, %14 : vector<1x6144xf32>
    %16 = vector.broadcast %3 : f32 to vector<1x6144xf32>
    %17 = arith.addf %15, %16 : vector<1x6144xf32>
    %c0_3 = arith.constant 0 : index
    %c0_4 = arith.constant 0 : index
    %18 = vector.load %arg3[%c0_3, %c0_4] : memref<1x6144xf32, #tpu.memory_space<vmem>>, vector<1x6144xf32>
    tpu.vector_store %arg3[%c0_3, %c0_4], %17 {strides = array<i32>} : memref<1x6144xf32, #tpu.memory_space<vmem>>, vector<1x6144xf32>,
    return
  }
  func.func @transform_0(%arg0: i32) -> i32 {
    %c0_i32 = arith.constant 0 : i32
    %c0_i32_0 = arith.constant 0 : i32
    return %c0_i32 : i32
  }
  func.func @transform_1(%arg0: i32) -> (i32, i32) {
    %c0_i32 = arith.constant 0 : i32
    %c0_i32_0 = arith.constant 0 : i32
    return %arg0, %c0_i32 : i32, i32
  }
  func.func @transform_2(%arg0: i32) -> (i32, i32) {
    %c0_i32 = arith.constant 0 : i32
    %c0_i32_0 = arith.constant 0 : i32
    return %arg0, %c0_i32 : i32, i32
  }
}

</mosaic_0001>

<bundles_post_ra>
// kernel: _run_elementwise.1
= control target key start
LH: loop header
LB: loop body
LE: loop exit
PB: predicated region body
PF: predicated region fallthrough
CT: control target
= control target key end

     0   :  { %7 = vsyncpa [#allocation3], 0  ;;  %s157_s12 = smov [#allocation2]   ;;  %s259_s0 = inlined_call_operand.vmem [shape: f32[4], index: 0, kind: input, shape index: {}]   ;;  %s260_s1 = inlined_call_operand.vmem [shape: f32[1,6144], index: 1, kind: input, shape index: {}]   ;;  %s261_s2 = inlined_call_operand.vmem [shape: f32[1,6144], index: 2, kind: output, shape index: {}]  }
   0x1   :  { %s13_s11 = sshll.u32 %s259_s0, 4  ;;  %s14_s11 = int_to_ptr.vmem [resolvable:$true] %s13_s11 }
   0x2   :  { %16 = dma.vmem_to_smem %s14_s11, 16, %s157_s12, [#allocation3]  }
   0x3   :  { %155 = dma.done.wait [#allocation3], 16  }
   0x4   :  { %156 = vsyncadd [#allocation3], 4294967280 }
   0x5   :  { %23 = sfence }
   0x6   :  { %s24_s13 = sld [smem:[#allocation2]]  ;;  %v28_v0 = vld [vmem:[%s260_s1] sm:$0xff]  ;;  %v29_v1 = vld [vmem:[%s260_s1 + $0x8] sm:$0xff]  ;;  %v30_v2 = vld [vmem:[%s260_s1 + $0x10] sm:$0xff] }
   0x7   :  { %s91_s14 = sld [smem:[#allocation2 + $0x1]]  ;;  %v31_v3 = vld [vmem:[%s260_s1 + $0x18] sm:$0xff]  ;;  %v32_v4 = vld [vmem:[%s260_s1 + $0x20] sm:$0xff]  ;;  %v33_v5 = vld [vmem:[%s260_s1 + $0x28] sm:$0xff] }
   0x8   :  { %s92_s15 = sld [smem:[#allocation2 + $0x2]] }
   0x9   :  { %s202_s1 = sld [smem:[#allocation2 + $0x3]] }
   0xc   :  { %v34_v6 = vstv %s24_s13 }
   0xd   :  { %v35_v7 = vmul.f32 %v34_v6, %v28_v0  ;;  %v41_v8 = vstv %s91_s14  ;;  %v36_v9 = vmul.f32 %v34_v6, %v29_v1  ;;  %v37_v10 = vmul.f32 %v34_v6, %v30_v2 }
   0xe   :  { %v38_v11 = vmul.f32 %v34_v6, %v31_v3  ;;  %v39_v12 = vmul.f32 %v34_v6, %v32_v4  ;;  %v40_v13 = vmul.f32 %v34_v6, %v33_v5  ;;  %v194_v17 = vstv %s92_s15 }
   0xf   :  { %v42_v14 = vadd.f32 %v41_v8, %v35_v7  ;;  %v43_v15 = vadd.f32 %v41_v8, %v36_v9  ;;  %v44_v16 = vadd.f32 %v41_v8, %v37_v10  ;;  %v73_v3 = vstv %s202_s1 }
  0x10   :  { %v45_v18 = vadd.f32 %v41_v8, %v38_v11  ;;  %v46_v22 = vadd.f32 %v41_v8, %v39_v12  ;;  %v196_v26 = vadd.f32 %v41_v8, %v40_v13 }
  0x11   :  { %v94_v19 = vand.u32 2147483647, %v42_v14  ;;  %v96_v20 = vcvt.f32.s32 %v42_v14  ;;  %v102_v21 = vand.u32 2147483647, %v43_v15  ;;  %v104_v23 = vcvt.f32.s32 %v43_v15 }
  0x12   :  { %v110_v24 = vand.u32 2147483647, %v44_v16  ;;  %v112_v25 = vcvt.f32.s32 %v44_v16  ;;  %v99_v29 = vand.u32 2147483648, %v42_v14  ;;  %v107_v30 = vand.u32 2147483648, %v43_v15 }
  0x13   :  { %vm198_vm0 = vcmp.lt.f32.partialorder %v94_v19, 8388608.0  ;;  %v97_v28 = vcvt.s32.f32 %v96_v20  ;;  %v105_v31 = vcvt.s32.f32 %v104_v23  ;;  %v115_v33 = vand.u32 2147483648, %v44_v16 }
  0x14   :  { %v113_v32 = vcvt.s32.f32 %v112_v25  ;;  %v118_v34 = vand.u32 2147483647, %v45_v18  ;;  %vm204_vm1 = vcmp.lt.f32.partialorder %v102_v21, 8388608.0  ;;  %v120_v37 = vcvt.f32.s32 %v45_v18 }
  0x15   :  { %v98_v35 = vand.u32 2147483647, %v97_v28  ;;  %v126_v38 = vand.u32 2147483647, %v46_v22  ;;  %v106_v39 = vand.u32 2147483647, %v105_v31  ;;  %v128_v42 = vcvt.f32.s32 %v46_v22 }
  0x16   :  { %vm208_vm2 = vcmp.lt.f32.partialorder %v110_v24, 8388608.0  ;;  %v114_v41 = vand.u32 2147483647, %v113_v32  ;;  %vm212_vm3 = vcmp.lt.f32.partialorder %v118_v34, 8388608.0  ;;  %v121_v45 = vcvt.s32.f32 %v120_v37 }
  0x17   :  { %v100_v43 = vor.u32 %v99_v29, %v98_v35  ;;  %v123_v46 = vand.u32 2147483648, %v45_v18  ;;  %v108_v47 = vor.u32 %v107_v30, %v106_v39  ;;  %v129_v49 = vcvt.s32.f32 %v128_v42 }
  0x18   :  { %v116_v48 = vor.u32 %v115_v33, %v114_v41  ;;  %v131_v50 = vand.u32 2147483648, %v46_v22  ;;  %v122_v52 = vand.u32 2147483647, %v121_v45  ;;  %vm218_vm4 = vcmp.lt.f32.partialorder %v126_v38, 8388608.0 }
  0x19   :  { %v101_v51 = vsel %vm198_vm0, %v100_v43, %v42_v14  ;;  %v136_v54 = vcvt.f32.s32 %v196_v26  ;;  %v109_v56 = vsel %vm204_vm1, %v108_v47, %v43_v15  ;;  %v130_v58 = vand.u32 2147483647, %v129_v49 }
  0x1a   :  { %v54_v55 = vmax.f32 %v101_v51, 0.0  ;;  %v117_v57 = vsel %vm208_vm2, %v116_v48, %v44_v16  ;;  %v55_v59 = vmax.f32 %v109_v56, 0.0  ;;  %v124_v61 = vor.u32 %v123_v46, %v122_v52 }
  0x1b   :  { %v56_v60 = vmax.f32 %v117_v57, 0.0  ;;  %v134_v62 = vand.u32 2147483647, %v196_v26  ;;  %v132_v0 = vor.u32 %v131_v50, %v130_v58  ;;  %v137_v1 = vcvt.s32.f32 %v136_v54 }
  0x1c   :  { %v60_v63 = vmin.f32 %v54_v55, 255.0  ;;  %v139_v2 = vand.u32 2147483648, %v196_v26  ;;  %v61_v4 = vmin.f32 %v55_v59, 255.0  ;;  %v125_v6 = vsel %vm212_vm3, %v124_v61, %v45_v18 }
  0x1d   :  { %v62_v5 = vmin.f32 %v56_v60, 255.0  ;;  %v57_v8 = vmax.f32 %v125_v6, 0.0  ;;  %v133_v9 = vsel %vm218_vm4, %v132_v0, %v46_v22  ;;  %v138_v10 = vand.u32 2147483647, %v137_v1 }
  0x1e   :  { %v67_v7 = vmul.f32 %v194_v17, %v60_v63  ;;  %v68_v11 = vmul.f32 %v194_v17, %v61_v4  ;;  %v58_v13 = vmax.f32 %v133_v9, 0.0  ;;  %vm135_vm5 = vcmp.lt.f32.partialorder %v134_v62, 8388608.0 }
  0x1f   :  { %v69_v12 = vmul.f32 %v194_v17, %v62_v5  ;;  %v63_v15 = vmin.f32 %v57_v8, 255.0  ;;  %v140_v16 = vor.u32 %v139_v2, %v138_v10 }
  0x20   :  { %v74_v14 = vadd.f32 %v73_v3, %v67_v7  ;;  %v75_v19 = vadd.f32 %v73_v3, %v68_v11  ;;  %v64_v21 = vmin.f32 %v58_v13, 255.0 }
  0x21   :  { %v76_v20 = vadd.f32 %v73_v3, %v69_v12  ;;  %v70_v18 = vmul.f32 %v194_v17, %v63_v15  ;;  %v141_v22 = vsel %vm135_vm5, %v140_v16, %v196_v26 }
  0x22   :  { %80 = vst [vmem:[%s261_s2] sm:$0xff] %v74_v14  ;;  %v71_v23 = vmul.f32 %v194_v17, %v64_v21  ;;  %v59_v24 = vmax.f32 %v141_v22, 0.0 }
  0x23   :  { %81 = vst [vmem:[%s261_s2 + $0x8] sm:$0xff] %v75_v19  ;;  %v77_v25 = vadd.f32 %v73_v3, %v70_v18 }
  0x24   :  { %82 = vst [vmem:[%s261_s2 + $0x10] sm:$0xff] %v76_v20  ;;  %v78_v27 = vadd.f32 %v73_v3, %v71_v23  ;;  %v65_v28 = vmin.f32 %v59_v24, 255.0 }
  0x25   :  { %83 = vst [vmem:[%s261_s2 + $0x18] sm:$0xff] %v77_v25 }
  0x26   :  { %84 = vst [vmem:[%s261_s2 + $0x20] sm:$0xff] %v78_v27  ;;  %v72_v26 = vmul.f32 %v194_v17, %v65_v28 }
  0x28   :  { %v79_v29 = vadd.f32 %v73_v3, %v72_v26 }
  0x2a   :  { %85 = vst [vmem:[%s261_s2 + $0x28] sm:$0xff] %v79_v29 }
  0x2b   :  { %90 = vsyncpa [#allocation3], 1 }

</bundles_post_ra>
